<compile_context>
chip_gen: v6e
topology: v6e:2x2x1
jax: 0.10.0
libtpu: 0.0.40
codegen_flags: <defaults>
</compile_context>

<pallas_src>
import math

import jax
import jax.numpy as jnp
from jax.experimental import pallas as pl
from jax.experimental.pallas import tpu as pltpu


def _build_pe(max_len: int, d_model: int) -> jnp.ndarray:
    """Deterministic sinusoidal table, shape (max_len, 1, d_model) — identical
    to the PyTorch buffer `pe` after unsqueeze(0).transpose(0, 1)."""
    position = jnp.arange(max_len, dtype=jnp.float32)[:, None]          # (L, 1)
    div_term = jnp.exp(
        jnp.arange(0, d_model, 2, dtype=jnp.float32)
        * (-math.log(10000.0) / d_model)
    )                                                                    # (D/2,)
    angles = position * div_term                                         # (L, D/2)
    pe = jnp.zeros((max_len, d_model), dtype=jnp.float32)
    pe = pe.at[:, 0::2].set(jnp.sin(angles))
    pe = pe.at[:, 1::2].set(jnp.cos(angles))
    return pe[:, None, :]                                                # (L, 1, D)


def _pe_add_kernel(x_ref, pe_ref, o_ref):
    # x_ref/o_ref : (tile_s, batch, d_model)   pe_ref : (tile_s, 1, d_model)
    # One VPU add per vreg, broadcasting pe over the batch (sublane) axis.
    o_ref[...] = (x_ref[...] + pe_ref[...]).astype(o_ref.dtype)


def _sublane(itemsize: int) -> int:
    # sublane packing granularity: 8 for 32-bit, 16 for 16-bit, 32 for 8-bit
    return max(8, 32 // max(1, itemsize))


def _choose_tile_s(seq, batch, d_model, x_item, pe_item, out_item) -> int:
    """Seq-tile size: largest that keeps double-buffered (x, pe, out) blocks
    within a VMEM budget safe for v7x, accounting for sublane/lane padding."""
    pad = lambda n, m: -(-n // m) * m
    lane_d = pad(d_model, 128)
    row_bytes = (
        pad(batch, _sublane(x_item)) * lane_d * x_item       # x block, per seq row
        + pad(batch, _sublane(out_item)) * lane_d * out_item   # out block
        + pad(1, _sublane(pe_item)) * lane_d * pe_item          # pe block
    )
    budget = 20 << 20  # double-buffered blocks stay well under v7x's 32 MiB scoped
    max_rows = max(1, budget // (2 * row_bytes))
    tile = min(seq, 1024, max_rows)
    if tile < seq:
        tile = max(8, (tile // 8) * 8)        # keep sublane-friendly tile edges
    elif seq >= 128:
        # whole seq would fit in one tile: split in two so both v7x TCs get work
        tile = pad(pl.cdiv(seq, 2), 8)
    return tile


def positional_encoding_old(x: jnp.ndarray, pe: jnp.ndarray, *,
                            donate_x: bool = False) -> jnp.ndarray:
    """x: (seq, batch, d_model); pe: (max_len, 1, d_model) or (max_len, d_model).
    Returns x + pe[:seq] with PyTorch-style dtype promotion (eval-mode dropout
    == identity)."""
    seq, batch, d_model = x.shape
    pe3 = pe if pe.ndim == 3 else pe[:, None, :]          # free contiguous reshape
    assert pe3.shape[1] == 1 and pe3.shape[2] == d_model and pe3.shape[0] >= seq

    out_dtype = jnp.promote_types(x.dtype, pe3.dtype)
    x_item = jnp.dtype(x.dtype).itemsize
    pe_item = jnp.dtype(pe3.dtype).itemsize
    out_item = jnp.dtype(out_dtype).itemsize

    tile_s = _choose_tile_s(seq, batch, d_model, x_item, pe_item, out_item)
    grid = (pl.cdiv(seq, tile_s),)

    cost = pl.CostEstimate(
        flops=seq * batch * d_model,
        transcendentals=0,
        bytes_accessed=seq * batch * d_model * (x_item + out_item)
        + seq * d_model * pe_item,
    )

    aliases = {0: 0} if (donate_x and out_dtype == x.dtype) else {}

    # Note: for d_model < 128 the trailing lanes are masked in-register, but the
    # block spans full (batch, d_model) so the HBM DMA itself stays contiguous.
    return pl.pallas_call(
        _pe_add_kernel,
        out_shape=jax.ShapeDtypeStruct((seq, batch, d_model), out_dtype),
        grid_spec=pl.GridSpec(
            grid=grid,
            in_specs=[
                # x block: tile_s seq rows, full batch, full d_model (contiguous).
                pl.BlockSpec((tile_s, batch, d_model), lambda s: (s, 0, 0)),
                # pe block: only the seq tiles in use are ever fetched; the rest
                # of the (max_len, 1, d_model) buffer stays in HBM untouched.
                pl.BlockSpec((tile_s, 1, d_model), lambda s: (s, 0, 0)),
            ],
            out_specs=pl.BlockSpec((tile_s, batch, d_model), lambda s: (s, 0, 0)),
        ),
        compiler_params=pltpu.CompilerParams(
            dimension_semantics=("parallel",),
            vmem_limit_bytes=32 << 20,
        ),
        cost_estimate=cost,
        input_output_aliases=aliases,
    )(x, pe3)


if __name__ == "__main__":
    d_model = 32
    seq_len = 8
    batch = 2
    max_len = 64  # only pe[:seq] is consumed

    key = jax.random.PRNGKey(0)
    x = jax.random.normal(key, (seq_len, batch, d_model), dtype=jnp.float32)

    pe = _build_pe(max_len, d_model)

    out = jax.block_until_ready(positional_encoding_old(x, pe))

    # sanity check against plain-JAX reference (eval-mode dropout = identity)
    ref = x + pe[:seq_len]
    assert out.shape == (seq_len, batch, d_model)
    assert out.dtype == ref.dtype
    assert jnp.allclose(out, ref, atol=1e-6), "mismatch vs reference"

    print("KERNEL_OK")
</pallas_src>

<mosaic_0001>
module attributes {stable_mosaic.version = 11 : i64} {
  func.func @_pe_add_kernel(%arg0: i32, %arg1: memref<8x2x32xf32, #tpu.memory_space<vmem>>, %arg2: memref<8x1x32xf32, #tpu.memory_space<vmem>>, %arg3: memref<8x2x32xf32, #tpu.memory_space<vmem>>) attributes {dimension_semantics = [#tpu.dimension_semantics<parallel>], iteration_bounds = array<i64: 1>, scalar_prefetch = 0 : i64, scratch_operands = 0 : i64, tpu.core_type = #tpu.core_type<tc>, window_params = [{transform_indices = @transform_0, window_bounds = array<i64: 8, 2, 32>}, {transform_indices = @transform_1, window_bounds = array<i64: 8, 1, 32>}, {transform_indices = @transform_2, window_bounds = array<i64: 8, 2, 32>}]} {
    %c0 = arith.constant 0 : index
    %c0_0 = arith.constant 0 : index
    %c0_1 = arith.constant 0 : index
    %0 = vector.load %arg1[%c0, %c0_0, %c0_1] : memref<8x2x32xf32, #tpu.memory_space<vmem>>, vector<8x2x32xf32>
    %c0_2 = arith.constant 0 : index
    %c0_3 = arith.constant 0 : index
    %c0_4 = arith.constant 0 : index
    %1 = vector.load %arg2[%c0_2, %c0_3, %c0_4] : memref<8x1x32xf32, #tpu.memory_space<vmem>>, vector<8x1x32xf32>
    %2 = vector.broadcast %1 : vector<8x1x32xf32> to vector<8x2x32xf32>
    %3 = arith.addf %0, %2 : vector<8x2x32xf32>
    %c0_5 = arith.constant 0 : index
    %c0_6 = arith.constant 0 : index
    %c0_7 = arith.constant 0 : index
    %4 = vector.load %arg3[%c0_5, %c0_6, %c0_7] : memref<8x2x32xf32, #tpu.memory_space<vmem>>, vector<8x2x32xf32>
    tpu.vector_store %arg3[%c0_5, %c0_6, %c0_7], %3 {strides = array<i32>} : memref<8x2x32xf32, #tpu.memory_space<vmem>>, vector<8x2x32xf32>,
    return
  }
  func.func @transform_0(%arg0: i32) -> (i32, i32, i32) {
    %c0_i32 = arith.constant 0 : i32
    %c0_i32_0 = arith.constant 0 : i32
    %c0_i32_1 = arith.constant 0 : i32
    return %arg0, %c0_i32, %c0_i32_0 : i32, i32, i32
  }
  func.func @transform_1(%arg0: i32) -> (i32, i32, i32) {
    %c0_i32 = arith.constant 0 : i32
    %c0_i32_0 = arith.constant 0 : i32
    %c0_i32_1 = arith.constant 0 : i32
    return %arg0, %c0_i32, %c0_i32_0 : i32, i32, i32
  }
  func.func @transform_2(%arg0: i32) -> (i32, i32, i32) {
    %c0_i32 = arith.constant 0 : i32
    %c0_i32_0 = arith.constant 0 : i32
    %c0_i32_1 = arith.constant 0 : i32
    return %arg0, %c0_i32, %c0_i32_0 : i32, i32, i32
  }
}

</mosaic_0001>

<bundles_post_ra>
// kernel: tpu_custom_call.1
= control target key start
LH: loop header
LB: loop body
LE: loop exit
PB: predicated region body
PF: predicated region fallthrough
CT: control target
= control target key end

     0   :  { %vm84_vm0 = vcmask 254976   ;;  %s219_s0 = inlined_call_operand.vmem [shape: f32[8,2,32], index: 0, kind: input, shape index: {}]   ;;  %s220_s1 = inlined_call_operand.vmem [shape: f32[64,1,32], index: 1, kind: input, shape index: {}]   ;;  %s221_s2 = inlined_call_operand.hbm [shape: f32[8,2,32], index: 2, kind: output, shape index: {}]  }
   0x1   :  { %v12_v0 = vld [vmem:[%s219_s0] sm:$0x3]  ;;  %v13_v3 = vld [vmem:[%s219_s0 + $0x2] sm:$0x3]  ;;  %v14_v5 = vld [vmem:[%s219_s0 + $0x4] sm:$0x3] }
   0x2   :  { %v109_v1 = vld [vmem:[%s220_s1] ss:$0 sm:$0xff]  ;;  %v110_v4 = vld [vmem:[%s220_s1 + $0x1] ss:$0 sm:$0xff]  ;;  %v111_v7 = vld [vmem:[%s220_s1 + $0x2] ss:$0 sm:$0xff] }
   0x3   :  { %v76_v2 = vadd.f32 %v109_v1, %v12_v0  ;;  %v77_v6 = vadd.f32 %v110_v4, %v13_v3  ;;  %v15_v8 = vld [vmem:[%s219_s0 + $0x6] sm:$0x3]  ;;  %v112_v9 = vld [vmem:[%s220_s1 + $0x3] ss:$0 sm:$0xff]  ;;  %v78_v10 = vadd.f32 %v111_v7, %v14_v5  ;;  %v16_v12 = vld [vmem:[%s219_s0 + $0x8] sm:$0x3] }
   0x4   :  { %v79_v11 = vadd.f32 %v112_v9, %v15_v8  ;;  %v113_v13 = vld [vmem:[%s220_s1 + $0x4] ss:$0 sm:$0xff]  ;;  %v17_v14 = vld [vmem:[%s219_s0 + $0xa] sm:$0x3]  ;;  %v114_v16 = vld [vmem:[%s220_s1 + $0x5] ss:$0 sm:$0xff] }
   0x5   :  { %85 = vst.msk [vmem:[#allocation2] sm:$0x3] %vm84_vm0, %v76_v2  ;;  %86 = vst.msk [vmem:[#allocation2 + $0x2] sm:$0x3] %vm84_vm0, %v77_v6  ;;  %v80_v15 = vadd.f32 %v113_v13, %v16_v12  ;;  %v18_v17 = vld [vmem:[%s219_s0 + $0xc] sm:$0x3]  ;;  %v81_v19 = vadd.f32 %v114_v16, %v17_v14 }
   0x6   :  { %v115_v18 = vld [vmem:[%s220_s1 + $0x6] ss:$0 sm:$0xff]  ;;  %87 = vst.msk [vmem:[#allocation2 + $0x4] sm:$0x3] %vm84_vm0, %v78_v10  ;;  %88 = vst.msk [vmem:[#allocation2 + $0x6] sm:$0x3] %vm84_vm0, %v79_v11 }
   0x7   :  { %v82_v20 = vadd.f32 %v115_v18, %v18_v17  ;;  %v19_v21 = vld [vmem:[%s219_s0 + $0xe] sm:$0x3]  ;;  %v116_v22 = vld [vmem:[%s220_s1 + $0x7] ss:$0 sm:$0xff] }
   0x8   :  { %7 = vsyncpa [#allocation3], 0  ;;  %89 = vst.msk [vmem:[#allocation2 + $0x8] sm:$0x3] %vm84_vm0, %v80_v15  ;;  %v83_v23 = vadd.f32 %v116_v22, %v19_v21  ;;  %s142_s13 = smov [#allocation2]  }
   0x9   :  { %s98_s14 = sshll.u32 %s142_s13, 4  ;;  %90 = vst.msk [vmem:[#allocation2 + $0xa] sm:$0x3] %vm84_vm0, %v81_v19  ;;  %91 = vst.msk [vmem:[#allocation2 + $0xc] sm:$0x3] %vm84_vm0, %v82_v20  ;;  %s99_s14 = int_to_ptr.vmem [resolvable:$true] %s98_s14 }
   0xa   :  { %92 = vst.msk [vmem:[#allocation2 + $0xe] sm:$0x3] %vm84_vm0, %v83_v23  ;;  %s120_s15 = scalar_lea.vmem %s99_s14, 256  ;;  %p125_p1 = scmp.lt.s32.totalorder %s99_s14, %s99_s14 }
   0xb   :  { %p121_p0 = scmp.ne.s32.totalorder %s99_s14, %s120_s15  ;;  %p126_p2 = scmp.lt.s32.totalorder %s120_s15, %s120_s15 }
   0xd   :  { %p127_p3 = por %p126_p2, %p125_p1 }
   0xf   :  { %p128_p4 = pnand %p127_p3, %p121_p0 }
  0x11   :  { %131 = shalt.err (!%p128_p4)
}
  0x12   :  { %s143_s0 = smov 32   ;;  %s144_s1 = smov 2  }
  0x13   :  { %104 = dma.vmem_to_hbm [thread:$0]  %s99_s14, 256, %s221_s2, [#allocation3], %s143_s0, %s143_s0, %s144_s1  }
  0x14   :  { %140 = dma.done.wait [#allocation3], 256  }
  0x15   :  { %141 = vsyncadd [#allocation3], 4294967040 }
  0x16   :  { %108 = vsyncpa [#allocation3], 1 }

</bundles_post_ra>
